<compile_context>
chip_gen: v7x
topology: tpu7x:2x2x1
jax: 0.10.0
libtpu: 0.0.40
codegen_flags: <defaults>
</compile_context>

<pallas_src>
import functools

import jax
import jax.numpy as jnp
from jax.experimental import pallas as pl
from jax.experimental.pallas import tpu as pltpu

NEG_SLOPE = 0.01   # F.leaky_relu default
HIDDEN1 = 128      # fc_1 width == concat width
HIDDEN2 = 64       # fc_2 width
OUT_PAD = 128      # lane-dense padded output width (>= action_dim)


def _round_up(x, m):
    return (x + m - 1) // m * m


def _leaky_relu(x):
    return jnp.where(x > 0, x, NEG_SLOPE * x)


def qnetwork_kernel(x_ref, a_ref, ws_ref, wa_ref, bin_ref, w1_ref, b1_ref,
                    w2_ref, b2_ref, wo_ref, bo_ref, out_ref):
    """One batch tile: 5 small MXU pushes, f32 accumulation, f32 epilogue."""
    wdt = ws_ref.dtype

    # Fused fc_s / fc_a: two dots against pre-split halves of the
    # block-diagonal input weight, summed in f32 (no concat anywhere).
    h = jnp.dot(x_ref[...].astype(wdt), ws_ref[...],
                preferred_element_type=jnp.float32)
    h = h + jnp.dot(a_ref[...].astype(wdt), wa_ref[...],
                    preferred_element_type=jnp.float32)
    h = _leaky_relu(h + bin_ref[...])

    # fc_1
    q = _leaky_relu(
        jnp.dot(h.astype(w1_ref.dtype), w1_ref[...],
                preferred_element_type=jnp.float32) + b1_ref[...])

    # fc_2
    q = _leaky_relu(
        jnp.dot(q.astype(w2_ref.dtype), w2_ref[...],
                preferred_element_type=jnp.float32) + b2_ref[...])

    # fc_out (no activation) -> lane-dense 128-wide block (padded cols = 0)
    q = (jnp.dot(q.astype(wo_ref.dtype), wo_ref[...],
                 preferred_element_type=jnp.float32) + bo_ref[...])

    out_ref[...] = q.astype(out_ref.dtype)


def init_params(key, state_dim, action_dim):
    """Deterministic PyTorch-style init (uniform +-1/sqrt(fan_in)).

    Weights stored transposed relative to nn.Linear, i.e. (in, out).
    """
    def linear(key, fan_in, fan_out):
        kw, kb = jax.random.split(key)
        bound = 1.0 / jnp.sqrt(fan_in)
        w = jax.random.uniform(kw, (fan_in, fan_out), jnp.float32, -bound, bound)
        b = jax.random.uniform(kb, (fan_out,), jnp.float32, -bound, bound)
        return w, b

    k = jax.random.split(key, 5)
    ws, bs = linear(k[0], state_dim, 64)
    wa, ba = linear(k[1], action_dim, 64)
    w1, b1 = linear(k[2], HIDDEN1, HIDDEN1)
    w2, b2 = linear(k[3], HIDDEN1, HIDDEN2)
    wo, bo = linear(k[4], HIDDEN2, action_dim)
    return dict(ws=ws, bs=bs, wa=wa, ba=ba, w1=w1, b1=b1,
                w2=w2, b2=b2, wo=wo, bo=bo)


def prepare_params(params, state_dim, action_dim, compute_dtype=jnp.bfloat16):
    """One-time preprocessing.

    * fc_s / fc_a weights padded to full 128-wide halves of the block-diagonal
      input weight (so the kernel never concatenates x and a).
    * fc_out weight/bias zero-padded to 128 lanes (lane-dense output store).
    * MXU operands cast to `compute_dtype` (bf16 by default); biases stay f32.
    """
    w_s = jnp.zeros((state_dim, HIDDEN1), jnp.float32).at[:, :64].set(params["ws"])
    w_a = jnp.zeros((action_dim, HIDDEN1), jnp.float32).at[:, 64:].set(params["wa"])
    b_in = jnp.concatenate([params["bs"], params["ba"]])[None, :]

    wo = jnp.zeros((HIDDEN2, OUT_PAD), jnp.float32).at[:, :action_dim].set(params["wo"])
    bo = jnp.zeros((OUT_PAD,), jnp.float32).at[:action_dim].set(params["bo"])

    return dict(
        w_s=w_s.astype(compute_dtype),
        w_a=w_a.astype(compute_dtype),
        b_in=b_in,                                   # biases stay f32 (VPU work)
        w1=params["w1"].astype(compute_dtype),
        b1=params["b1"][None, :],
        w2=params["w2"].astype(compute_dtype),
        b2=params["b2"][None, :],
        wo=wo.astype(compute_dtype),
        bo=bo[None, :],
    )


def _choose_tile(batch, batch_tile):
    """Pick (tile_rows, padded_batch, n_steps): sublane-aligned, minimal pad,
    and >= 2 grid steps once the batch is big enough (v7x megacore)."""
    b8 = _round_up(max(batch, 1), 8)
    batch_tile = max(8, _round_up(batch_tile, 8))
    min_steps = 2 if b8 >= 1024 else 1
    n_steps = max(min_steps, pl.cdiv(b8, batch_tile))
    tb = _round_up(pl.cdiv(b8, n_steps), 8)
    return tb, n_steps * tb, n_steps


def qnetwork_forward(x, a, prep, *, action_dim, batch_tile=2048,
                     out_dtype=None, xla_small_batch=0):
    """x: (B, state_dim), a: (B, action_dim) -> (B, action_dim)."""
    B, state_dim = x.shape
    compute_dtype = prep["w1"].dtype
    out_dtype = compute_dtype if out_dtype is None else out_dtype

    # Optional pure-XLA path for dispatch-bound tiny batches (off by default).
    if B <= xla_small_batch:
        h = _leaky_relu(x.astype(compute_dtype) @ prep["w_s"]
                        + a.astype(compute_dtype) @ prep["w_a"] + prep["b_in"])
        q = _leaky_relu(h.astype(compute_dtype) @ prep["w1"] + prep["b1"])
        q = _leaky_relu(q.astype(compute_dtype) @ prep["w2"] + prep["b2"])
        q = q.astype(compute_dtype) @ prep["wo"] + prep["bo"]
        return q[:, :action_dim].astype(out_dtype)

    tb, b_pad, n_steps = _choose_tile(B, batch_tile)
    if b_pad != B:
        # Only a handful of tail rows (<= tb); tile choice keeps this minimal.
        x = jnp.pad(x, ((0, b_pad - B), (0, 0)))
        a = jnp.pad(a, ((0, b_pad - B), (0, 0)))

    weights = (prep["w_s"], prep["w_a"], prep["b_in"], prep["w1"], prep["b1"],
               prep["w2"], prep["b2"], prep["wo"], prep["bo"])

    def const_spec(arr):
        # Weights/biases: one block, constant index -> DMA'd once, VMEM-resident.
        return pl.BlockSpec(arr.shape, lambda i: (0, 0))

    flops = 2 * b_pad * (state_dim * HIDDEN1 + action_dim * HIDDEN1
                         + HIDDEN1 * HIDDEN1 + HIDDEN1 * HIDDEN2
                         + HIDDEN2 * OUT_PAD)
    bytes_accessed = int(
        x.size * x.dtype.itemsize + a.size * a.dtype.itemsize
        + b_pad * OUT_PAD * jnp.dtype(out_dtype).itemsize
        + sum(int(w.size) * w.dtype.itemsize for w in weights))

    # VMEM budget: double-buffered lane-padded activation blocks + f32
    # intermediates + resident weights.  Raise the scoped limit (16/32 MiB
    # defaults) but stay well under v7x's 64 MiB physical VMEM.
    lane = 128
    vmem_est = (2 * tb * lane * x.dtype.itemsize
                + 2 * tb * lane * a.dtype.itemsize
                + 2 * tb * lane * jnp.dtype(out_dtype).itemsize
                + 4 * tb * lane * 4
                + 2 * sum(int(w.size) * w.dtype.itemsize for w in weights))
    vmem_limit = int(min(48 << 20, max(32 << 20, 2 * vmem_est)))

    out = pl.pallas_call(
        qnetwork_kernel,
        out_shape=jax.ShapeDtypeStruct((b_pad, OUT_PAD), out_dtype),
        grid=(n_steps,),
        in_specs=[pl.BlockSpec((tb, state_dim), lambda i: (i, 0)),
                  pl.BlockSpec((tb, a.shape[1]), lambda i: (i, 0))]
                 + [const_spec(w) for w in weights],
        out_specs=pl.BlockSpec((tb, OUT_PAD), lambda i: (i, 0)),
        compiler_params=pltpu.CompilerParams(
            dimension_semantics=("parallel",),
            vmem_limit_bytes=vmem_limit),
        cost_estimate=pl.CostEstimate(
            flops=int(flops), transcendentals=0, bytes_accessed=bytes_accessed),
    )(x, a, *weights)

    # Un-pad batch and lane-dense output columns with plain XLA slicing.
    return out[:B, :action_dim]


def qnetwork_ref(x, a, params):
    """Pure-JAX reference (matches the PyTorch forward)."""
    h1 = jax.nn.leaky_relu(x @ params["ws"] + params["bs"], NEG_SLOPE)
    h2 = jax.nn.leaky_relu(a @ params["wa"] + params["ba"], NEG_SLOPE)
    cat = jnp.concatenate([h1, h2], axis=-1)
    q = jax.nn.leaky_relu(cat @ params["w1"] + params["b1"], NEG_SLOPE)
    q = jax.nn.leaky_relu(q @ params["w2"] + params["b2"], NEG_SLOPE)
    return q @ params["wo"] + params["bo"]


if __name__ == "__main__":
    key = jax.random.PRNGKey(0)
    k_x, k_a, k_p = jax.random.split(key, 3)

    batch, state_dim, action_dim = 8, 16, 4
    x = jax.random.normal(k_x, (batch, state_dim), jnp.float32)
    a = jax.random.normal(k_a, (batch, action_dim), jnp.float32)

    params = init_params(k_p, state_dim, action_dim)
    q_ref = qnetwork_ref(x, a, params)

    fwd = functools.partial(qnetwork_forward, action_dim=action_dim)

    # Exact-parity path: f32 MXU operands, f32 output.
    prep_f32 = prepare_params(params, state_dim, action_dim,
                              compute_dtype=jnp.float32)
    q_f32 = jax.block_until_ready(fwd(x, a, prep_f32, out_dtype=jnp.float32))
    assert q_f32.shape == (batch, action_dim)
    assert jnp.allclose(q_f32, q_ref, atol=1e-4, rtol=1e-4), (
        float(jnp.max(jnp.abs(q_f32 - q_ref))))

    # Fast path (default): bf16 MXU operands + bf16 output, f32 accumulation.
    prep_bf16 = prepare_params(params, state_dim, action_dim)
    q_bf16 = jax.block_until_ready(fwd(x, a, prep_bf16))
    assert q_bf16.shape == (batch, action_dim)
    assert jnp.allclose(q_bf16.astype(jnp.float32), q_ref,
                        atol=5e-2, rtol=5e-2), (
        float(jnp.max(jnp.abs(q_bf16.astype(jnp.float32) - q_ref))))

    print("KERNEL_OK")
</pallas_src>

<mosaic_0001>
module attributes {stable_mosaic.version = 11 : i64} {
  func.func @qnetwork_kernel(%arg0: i32, %arg1: memref<8x16xf32, #tpu.memory_space<vmem>>, %arg2: memref<8x4xf32, #tpu.memory_space<vmem>>, %arg3: memref<16x128xf32, #tpu.memory_space<vmem>>, %arg4: memref<4x128xf32, #tpu.memory_space<vmem>>, %arg5: memref<1x128xf32, #tpu.memory_space<vmem>>, %arg6: memref<128x128xf32, #tpu.memory_space<vmem>>, %arg7: memref<1x128xf32, #tpu.memory_space<vmem>>, %arg8: memref<128x64xf32, #tpu.memory_space<vmem>>, %arg9: memref<1x64xf32, #tpu.memory_space<vmem>>, %arg10: memref<64x128xf32, #tpu.memory_space<vmem>>, %arg11: memref<1x128xf32, #tpu.memory_space<vmem>>, %arg12: memref<8x128xf32, #tpu.memory_space<vmem>>) attributes {dimension_semantics = [#tpu.dimension_semantics<parallel>], iteration_bounds = array<i64: 1>, scalar_prefetch = 0 : i64, scratch_operands = 0 : i64, tpu.core_type = #tpu.core_type<tc>, window_params = [{transform_indices = @transform_0, window_bounds = array<i64: 8, 16>}, {transform_indices = @transform_1, window_bounds = array<i64: 8, 4>}, {pipeline_mode = #tpu.pipeline_mode<synchronous>, transform_indices = @transform_2, window_bounds = array<i64: 16, 128>}, {pipeline_mode = #tpu.pipeline_mode<synchronous>, transform_indices = @transform_3, window_bounds = array<i64: 4, 128>}, {pipeline_mode = #tpu.pipeline_mode<synchronous>, transform_indices = @transform_4, window_bounds = array<i64: 1, 128>}, {pipeline_mode = #tpu.pipeline_mode<synchronous>, transform_indices = @transform_5, window_bounds = array<i64: 128, 128>}, {pipeline_mode = #tpu.pipeline_mode<synchronous>, transform_indices = @transform_6, window_bounds = array<i64: 1, 128>}, {pipeline_mode = #tpu.pipeline_mode<synchronous>, transform_indices = @transform_7, window_bounds = array<i64: 128, 64>}, {pipeline_mode = #tpu.pipeline_mode<synchronous>, transform_indices = @transform_8, window_bounds = array<i64: 1, 64>}, {pipeline_mode = #tpu.pipeline_mode<synchronous>, transform_indices = @transform_9, window_bounds = array<i64: 64, 128>}, {pipeline_mode = #tpu.pipeline_mode<synchronous>, transform_indices = @transform_10, window_bounds = array<i64: 1, 128>}, {transform_indices = @transform_11, window_bounds = array<i64: 8, 128>}]} {
    %c0 = arith.constant 0 : index
    %c0_0 = arith.constant 0 : index
    %0 = vector.load %arg1[%c0, %c0_0] : memref<8x16xf32, #tpu.memory_space<vmem>>, vector<8x16xf32>
    %c0_1 = arith.constant 0 : index
    %c0_2 = arith.constant 0 : index
    %1 = vector.load %arg3[%c0_1, %c0_2] : memref<16x128xf32, #tpu.memory_space<vmem>>, vector<16x128xf32>
    %cst = arith.constant dense<0.000000e+00> : vector<8x128xf32>
    %2 = tpu.matmul %0, %1, %cst {dimension_numbers = #tpu.dot_dimension_numbers<[1], [0], [0], [1], [0, 0, 1, 1], [], []>} : vector<8x16xf32>, vector<16x128xf32>, vector<8x128xf32> -> vector<8x128xf32>
    %c0_3 = arith.constant 0 : index
    %c0_4 = arith.constant 0 : index
    %3 = vector.load %arg2[%c0_3, %c0_4] : memref<8x4xf32, #tpu.memory_space<vmem>>, vector<8x4xf32>
    %c0_5 = arith.constant 0 : index
    %c0_6 = arith.constant 0 : index
    %4 = vector.load %arg4[%c0_5, %c0_6] : memref<4x128xf32, #tpu.memory_space<vmem>>, vector<4x128xf32>
    %cst_7 = arith.constant dense<0.000000e+00> : vector<8x128xf32>
    %5 = tpu.matmul %3, %4, %cst_7 {dimension_numbers = #tpu.dot_dimension_numbers<[1], [0], [0], [1], [0, 0, 1, 1], [], []>} : vector<8x4xf32>, vector<4x128xf32>, vector<8x128xf32> -> vector<8x128xf32>
    %6 = arith.addf %2, %5 : vector<8x128xf32>
    %c0_8 = arith.constant 0 : index
    %c0_9 = arith.constant 0 : index
    %7 = vector.load %arg5[%c0_8, %c0_9] : memref<1x128xf32, #tpu.memory_space<vmem>>, vector<1x128xf32>
    %8 = vector.broadcast %7 : vector<1x128xf32> to vector<8x128xf32>
    %9 = arith.addf %6, %8 : vector<8x128xf32>
    %cst_10 = arith.constant 0.000000e+00 : f32
    %10 = vector.broadcast %cst_10 : f32 to vector<8x128xf32>
    %11 = arith.cmpf ogt, %9, %10 : vector<8x128xf32>
    %cst_11 = arith.constant 0.00999999977 : f32
    %12 = vector.broadcast %cst_11 : f32 to vector<8x128xf32>
    %13 = arith.mulf %12, %9 : vector<8x128xf32>
    %14 = arith.select %11, %9, %13 : vector<8x128xi1>, vector<8x128xf32>
    %c0_12 = arith.constant 0 : index
    %c0_13 = arith.constant 0 : index
    %15 = vector.load %arg6[%c0_12, %c0_13] : memref<128x128xf32, #tpu.memory_space<vmem>>, vector<128x128xf32>
    %cst_14 = arith.constant dense<0.000000e+00> : vector<8x128xf32>
    %16 = tpu.matmul %14, %15, %cst_14 {dimension_numbers = #tpu.dot_dimension_numbers<[1], [0], [0], [1], [0, 0, 1, 1], [], []>} : vector<8x128xf32>, vector<128x128xf32>, vector<8x128xf32> -> vector<8x128xf32>
    %c0_15 = arith.constant 0 : index
    %c0_16 = arith.constant 0 : index
    %17 = vector.load %arg7[%c0_15, %c0_16] : memref<1x128xf32, #tpu.memory_space<vmem>>, vector<1x128xf32>
    %18 = vector.broadcast %17 : vector<1x128xf32> to vector<8x128xf32>
    %19 = arith.addf %16, %18 : vector<8x128xf32>
    %cst_17 = arith.constant 0.000000e+00 : f32
    %20 = vector.broadcast %cst_17 : f32 to vector<8x128xf32>
    %21 = arith.cmpf ogt, %19, %20 : vector<8x128xf32>
    %cst_18 = arith.constant 0.00999999977 : f32
    %22 = vector.broadcast %cst_18 : f32 to vector<8x128xf32>
    %23 = arith.mulf %22, %19 : vector<8x128xf32>
    %24 = arith.select %21, %19, %23 : vector<8x128xi1>, vector<8x128xf32>
    %c0_19 = arith.constant 0 : index
    %c0_20 = arith.constant 0 : index
    %25 = vector.load %arg8[%c0_19, %c0_20] : memref<128x64xf32, #tpu.memory_space<vmem>>, vector<128x64xf32>
    %cst_21 = arith.constant dense<0.000000e+00> : vector<8x64xf32>
    %26 = tpu.matmul %24, %25, %cst_21 {dimension_numbers = #tpu.dot_dimension_numbers<[1], [0], [0], [1], [0, 0, 1, 1], [], []>} : vector<8x128xf32>, vector<128x64xf32>, vector<8x64xf32> -> vector<8x64xf32>
    %c0_22 = arith.constant 0 : index
    %c0_23 = arith.constant 0 : index
    %27 = vector.load %arg9[%c0_22, %c0_23] : memref<1x64xf32, #tpu.memory_space<vmem>>, vector<1x64xf32>
    %28 = vector.broadcast %27 : vector<1x64xf32> to vector<8x64xf32>
    %29 = arith.addf %26, %28 : vector<8x64xf32>
    %cst_24 = arith.constant 0.000000e+00 : f32
    %30 = vector.broadcast %cst_24 : f32 to vector<8x64xf32>
    %31 = arith.cmpf ogt, %29, %30 : vector<8x64xf32>
    %cst_25 = arith.constant 0.00999999977 : f32
    %32 = vector.broadcast %cst_25 : f32 to vector<8x64xf32>
    %33 = arith.mulf %32, %29 : vector<8x64xf32>
    %34 = arith.select %31, %29, %33 : vector<8x64xi1>, vector<8x64xf32>
    %c0_26 = arith.constant 0 : index
    %c0_27 = arith.constant 0 : index
    %35 = vector.load %arg10[%c0_26, %c0_27] : memref<64x128xf32, #tpu.memory_space<vmem>>, vector<64x128xf32>
    %cst_28 = arith.constant dense<0.000000e+00> : vector<8x128xf32>
    %36 = tpu.matmul %34, %35, %cst_28 {dimension_numbers = #tpu.dot_dimension_numbers<[1], [0], [0], [1], [0, 0, 1, 1], [], []>} : vector<8x64xf32>, vector<64x128xf32>, vector<8x128xf32> -> vector<8x128xf32>
    %c0_29 = arith.constant 0 : index
    %c0_30 = arith.constant 0 : index
    %37 = vector.load %arg11[%c0_29, %c0_30] : memref<1x128xf32, #tpu.memory_space<vmem>>, vector<1x128xf32>
    %38 = vector.broadcast %37 : vector<1x128xf32> to vector<8x128xf32>
    %39 = arith.addf %36, %38 : vector<8x128xf32>
    %c0_31 = arith.constant 0 : index
    %c0_32 = arith.constant 0 : index
    %40 = vector.load %arg12[%c0_31, %c0_32] : memref<8x128xf32, #tpu.memory_space<vmem>>, vector<8x128xf32>
    tpu.vector_store %arg12[%c0_31, %c0_32], %39 {strides = array<i32>} : memref<8x128xf32, #tpu.memory_space<vmem>>, vector<8x128xf32>,
    return
  }
  func.func @transform_0(%arg0: i32) -> (i32, i32) {
    %c0_i32 = arith.constant 0 : i32
    %c0_i32_0 = arith.constant 0 : i32
    return %arg0, %c0_i32 : i32, i32
  }
  func.func @transform_1(%arg0: i32) -> (i32, i32) {
    %c0_i32 = arith.constant 0 : i32
    %c0_i32_0 = arith.constant 0 : i32
    return %arg0, %c0_i32 : i32, i32
  }
  func.func @transform_2(%arg0: i32) -> (i32, i32) {
    %c0_i32 = arith.constant 0 : i32
    %c0_i32_0 = arith.constant 0 : i32
    %c0_i32_1 = arith.constant 0 : i32
    return %c0_i32, %c0_i32_0 : i32, i32
  }
  func.func @transform_3(%arg0: i32) -> (i32, i32) {
    %c0_i32 = arith.constant 0 : i32
    %c0_i32_0 = arith.constant 0 : i32
    %c0_i32_1 = arith.constant 0 : i32
    return %c0_i32, %c0_i32_0 : i32, i32
  }
  func.func @transform_4(%arg0: i32) -> (i32, i32) {
    %c0_i32 = arith.constant 0 : i32
    %c0_i32_0 = arith.constant 0 : i32
    %c0_i32_1 = arith.constant 0 : i32
    return %c0_i32, %c0_i32_0 : i32, i32
  }
  func.func @transform_5(%arg0: i32) -> (i32, i32) {
    %c0_i32 = arith.constant 0 : i32
    %c0_i32_0 = arith.constant 0 : i32
    %c0_i32_1 = arith.constant 0 : i32
    return %c0_i32, %c0_i32_0 : i32, i32
  }
  func.func @transform_6(%arg0: i32) -> (i32, i32) {
    %c0_i32 = arith.constant 0 : i32
    %c0_i32_0 = arith.constant 0 : i32
    %c0_i32_1 = arith.constant 0 : i32
    return %c0_i32, %c0_i32_0 : i32, i32
  }
  func.func @transform_7(%arg0: i32) -> (i32, i32) {
    %c0_i32 = arith.constant 0 : i32
    %c0_i32_0 = arith.constant 0 : i32
    %c0_i32_1 = arith.constant 0 : i32
    return %c0_i32, %c0_i32_0 : i32, i32
  }
  func.func @transform_8(%arg0: i32) -> (i32, i32) {
    %c0_i32 = arith.constant 0 : i32
    %c0_i32_0 = arith.constant 0 : i32
    %c0_i32_1 = arith.constant 0 : i32
    return %c0_i32, %c0_i32_0 : i32, i32
  }
  func.func @transform_9(%arg0: i32) -> (i32, i32) {
    %c0_i32 = arith.constant 0 : i32
    %c0_i32_0 = arith.constant 0 : i32
    %c0_i32_1 = arith.constant 0 : i32
    return %c0_i32, %c0_i32_0 : i32, i32
  }
  func.func @transform_10(%arg0: i32) -> (i32, i32) {
    %c0_i32 = arith.constant 0 : i32
    %c0_i32_0 = arith.constant 0 : i32
    %c0_i32_1 = arith.constant 0 : i32
    return %c0_i32, %c0_i32_0 : i32, i32
  }
  func.func @transform_11(%arg0: i32) -> (i32, i32) {
    %c0_i32 = arith.constant 0 : i32
    %c0_i32_0 = arith.constant 0 : i32
    return %arg0, %c0_i32 : i32, i32
  }
}

</mosaic_0001>

<bundles_post_ra>
// kernel: tpu_custom_call.1
= control target key start
LH: loop header
LB: loop body
LE: loop exit
PB: predicated region body
PF: predicated region fallthrough
CT: control target
= control target key end

     0   :  { %vm48_vm0 = vcmask 1043456   ;;  %v751_v2 = vmov 0.0   ;;  %vm752_vm1 = vmmov 0   ;;  %vm44_vm2 = vcmask 31744   ;;  %s1006_s0 = inlined_call_operand.vmem [shape: f32[8,16], index: 0, kind: input, shape index: {}]   ;;  %s1007_s1 = inlined_call_operand.vmem [shape: f32[8,4], index: 1, kind: input, shape index: {}]   ;;  %s1008_s2 = inlined_call_operand.vmem [shape: f32[16,128], index: 2, kind: input, shape index: {}]   ;;  %s1009_s3 = inlined_call_operand.vmem [shape: f32[4,128], index: 3, kind: input, shape index: {}]   ;;  %s1010_s4 = inlined_call_operand.vmem [shape: f32[1,128], index: 4, kind: input, shape index: {}]   ;;  %s1011_s5 = inlined_call_operand.vmem [shape: f32[128,128], index: 5, kind: input, shape index: {}]   ;;  %s1012_s6 = inlined_call_operand.vmem [shape: f32[1,128], index: 6, kind: input, shape index: {}]   ;;  %s1013_s7 = inlined_call_operand.vmem [shape: f32[128,64], index: 7, kind: input, shape index: {}]   ;;  %s1014_s8 = inlined_call_operand.vmem [shape: f32[1,64], index: 8, kind: input, shape index: {}]   ;;  %s1015_s9 = inlined_call_operand.vmem [shape: f32[64,128], index: 9, kind: input, shape index: {}]   ;;  %s1016_s10 = inlined_call_operand.vmem [shape: f32[1,128], index: 10, kind: input, shape index: {}]   ;;  %s1017_s11 = inlined_call_operand.hbm [shape: f32[8,128], index: 11, kind: output, shape index: {}]  }
   0x1   :  { %v43_v0 = vld [vmem:[%s1009_s3] sm:$0xf]  ;;  %559 = vmatprep.subr.mxu1 %v751_v2  ;;  %561 = vmatprep.mubr.msk.f32.mxu1 %vm752_vm1, %v751_v2  ;;  %v41_v4 = vld [vmem:[%s1008_s2 + $0x8] sm:$0xff]  ;;  %v753_v6 = vmov 0.0|0.0   ;;  %v209_v9 = vld [vmem:[%s1011_s5 + $0x10] sm:$0xff]  ;;  %vm122_vm3 = vcmask 130048  }
   0x2   :  { %v42_v1 = vld [vmem:[%s1007_s1] sm:$0xff]  ;;  %560 = vmatpush3.msk.msra.mxu1 %vm48_vm0, %v43_v0  ;;  %663 = vmatprep.subr.bf16.mxu0 %v753_v6  ;;  %v208_v8 = vld [vmem:[%s1011_s5 + $0x8] sm:$0xff]  ;;  %v210_v11 = vld [vmem:[%s1011_s5 + $0x18] sm:$0xff] }
   0x3   :  { %v40_v3 = vld [vmem:[%s1008_s2] sm:$0xff]  ;;  %562 = vmatmul.mubr.msk.f32.vlgmr.msra.gmra.mrb[0].mxu1 %vm44_vm2, %v42_v1  ;;  %660 = vmatprep.subr.bf16.mxu1 %v753_v6  ;;  %v667_v13 = vpack.c.bf16 %v210_v11, %v209_v9 }
   0x4   :  { %v661_v5 = vpack.c.bf16 %v41_v4, %v40_v3  ;;  %v207_v7 = vld [vmem:[%s1011_s5] sm:$0xff]  ;;  %568 = vmatprep.mubr.msk.f32.mxu1 %vm752_vm1, %v751_v2  ;;  %603 = vmatprep.mubr.msk.f32.mxu0 %vm752_vm1, %v751_v2 }
   0x5   :  { %v664_v10 = vpack.c.bf16 %v208_v8, %v207_v7  ;;  %v39_v12 = vld [vmem:[%s1006_s0] sm:$0xff] }
   0x6   :  { %662 = vmatpush3.bf16.msra.mxu1 %v661_v5 }
   0x7   :  { %665 = vmatpush3.bf16.msra.mxu0 %v664_v10 }
   0x8   :  { %16 = vsyncpa [#allocation3], 0  ;;  %666 = vmatprep.subr.bf16.mxu0 %v753_v6  ;;  %v211_v14 = vld [vmem:[%s1011_s5 + $0x20] sm:$0xff]  ;;  %v212_v15 = vld [vmem:[%s1011_s5 + $0x28] sm:$0xff]  ;;  %687 = vmatprep.subr.bf16.mxu1 %v753_v6  ;;  %vm414_vm7 = vcmask 523264   ;;  %s754_s18 = smov [#allocation2]  }
   0x9   :  { %569 = vmatmul.mubr.msk.f32.vlgmr.msra.gmra.mrb[2].mxu1 %vm122_vm3, %v39_v12  ;;  %v670_v16 = vpack.c.bf16 %v212_v15, %v211_v14  ;;  %v213_v17 = vld [vmem:[%s1011_s5 + $0x30] sm:$0xff]  ;;  %v214_v18 = vld [vmem:[%s1011_s5 + $0x38] sm:$0xff]  ;;  %v215_v20 = vld [vmem:[%s1011_s5 + $0x40] sm:$0xff] }
   0xa   :  { %638 = vmatprep.mubr.msk.f32.mxu1 %vm752_vm1, %v751_v2  ;;  %v673_v19 = vpack.c.bf16 %v214_v18, %v213_v17  ;;  %v216_v21 = vld [vmem:[%s1011_s5 + $0x48] sm:$0xff]  ;;  %v217_v23 = vld [vmem:[%s1011_s5 + $0x50] sm:$0xff]  ;;  %v218_v24 = vld [vmem:[%s1011_s5 + $0x58] sm:$0xff] }
   0xb   :  { %668 = vmatpush3.bf16.msra.mxu0 %v667_v13  ;;  %v676_v22 = vpack.c.bf16 %v216_v21, %v215_v20  ;;  %v679_v25 = vpack.c.bf16 %v218_v24, %v217_v23  ;;  %v219_v26 = vld [vmem:[%s1011_s5 + $0x60] sm:$0xff]  ;;  %v220_v27 = vld [vmem:[%s1011_s5 + $0x68] sm:$0xff]  ;;  %v221_v29 = vld [vmem:[%s1011_s5 + $0x70] sm:$0xff] }
   0xc   :  { %669 = vmatprep.subr.bf16.mxu0 %v753_v6  ;;  %v682_v28 = vpack.c.bf16 %v220_v27, %v219_v26  ;;  %v222_v30 = vld [vmem:[%s1011_s5 + $0x78] sm:$0xff]  ;;  %v303_v32 = vld [vmem:[%s1013_s7] sm:$0xff]  ;;  %v304_v33 = vld [vmem:[%s1013_s7 + $0x8] sm:$0xff] }
   0xd   :  { %v685_v31 = vpack.c.bf16 %v222_v30, %v221_v29  ;;  %v305_v34 = vld [vmem:[%s1013_s7 + $0x10] sm:$0xff]  ;;  %v688_v35 = vpack.c.bf16 %v304_v33, %v303_v32  ;;  %v306_v36 = vld [vmem:[%s1013_s7 + $0x18] sm:$0xff]  ;;  %v307_v38 = vld [vmem:[%s1013_s7 + $0x20] sm:$0xff] }
   0xe   :  { %v691_v37 = vpack.c.bf16 %v306_v36, %v305_v34  ;;  %v308_v39 = vld [vmem:[%s1013_s7 + $0x28] sm:$0xff]  ;;  %v309_v41 = vld [vmem:[%s1013_s7 + $0x30] sm:$0xff]  ;;  %v310_v42 = vld [vmem:[%s1013_s7 + $0x38] sm:$0xff] }
   0xf   :  { %671 = vmatpush3.bf16.msra.mxu0 %v670_v16  ;;  %689 = vmatpush3.bf16.msra.mxu1 %v688_v35  ;;  %v694_v40 = vpack.c.bf16 %v308_v39, %v307_v38  ;;  %v697_v43 = vpack.c.bf16 %v310_v42, %v309_v41  ;;  %v311_v44 = vld [vmem:[%s1013_s7 + $0x40] sm:$0xff]  ;;  %v312_v45 = vld [vmem:[%s1013_s7 + $0x48] sm:$0xff]  ;;  %v313_v47 = vld [vmem:[%s1013_s7 + $0x50] sm:$0xff] }
  0x10   :  { %672 = vmatprep.subr.bf16.mxu0 %v753_v6  ;;  %690 = vmatprep.subr.bf16.mxu1 %v753_v6  ;;  %v700_v46 = vpack.c.bf16 %v312_v45, %v311_v44  ;;  %v314_v48 = vld [vmem:[%s1013_s7 + $0x58] sm:$0xff]  ;;  %v315_v50 = vld [vmem:[%s1013_s7 + $0x60] sm:$0xff]  ;;  %v316_v51 = vld [vmem:[%s1013_s7 + $0x68] sm:$0xff] }
  0x11   :  { %v703_v49 = vpack.c.bf16 %v314_v48, %v313_v47  ;;  %v706_v52 = vpack.c.bf16 %v316_v51, %v315_v50  ;;  %v506_v56 = vld [vmem:[%s1010_s4] ss:$0 sm:$0xff]  ;;  %v317_v62 = vld [vmem:[%s1013_s7 + $0x70] sm:$0xff]  ;;  %v318_v63 = vld [vmem:[%s1013_s7 + $0x78] sm:$0xff] }
  0x12   :  { %v709_v0 = vpack.c.bf16 %v318_v63, %v317_v62  ;;  %v399_v1 = vld [vmem:[%s1015_s9] sm:$0xff]  ;;  %v400_v3 = vld [vmem:[%s1015_s9 + $0x8] sm:$0xff]  ;;  %v402_v5 = vld [vmem:[%s1015_s9 + $0x18] sm:$0xff] }
  0x13   :  { %674 = vmatpush3.bf16.msra.mxu0 %v673_v19  ;;  %692 = vmatpush3.bf16.msra.mxu1 %v691_v37  ;;  %v712_v4 = vpack.c.bf16 %v400_v3, %v399_v1  ;;  %v403_v8 = vld [vmem:[%s1015_s9 + $0x20] sm:$0xff]  ;;  %v404_v9 = vld [vmem:[%s1015_s9 + $0x28] sm:$0xff]  ;;  %v405_v17 = vld [vmem:[%s1015_s9 + $0x30] sm:$0xff] }
  0x14   :  { %675 = vmatprep.subr.bf16.mxu0 %v753_v6  ;;  %693 = vmatprep.subr.bf16.mxu1 %v753_v6  ;;  %v718_v10 = vpack.c.bf16 %v404_v9, %v403_v8  ;;  %v507_v11 = vld [vmem:[%s1012_s6] ss:$0 sm:$0xff]  ;;  %v406_v18 = vld [vmem:[%s1015_s9 + $0x38] sm:$0xff] }
  0x15   :  { %v508_v19 = vld [vmem:[%s1014_s8] ss:$0 sm:$0xff] }
  0x17   :  { %677 = vmatpush3.bf16.msra.mxu0 %v676_v22  ;;  %695 = vmatpush3.bf16.msra.mxu1 %v694_v40 }
  0x18   :  { %678 = vmatprep.subr.bf16.mxu0 %v753_v6  ;;  %696 = vmatprep.subr.bf16.mxu1 %v753_v6 }
  0x1b   :  { %680 = vmatpush3.bf16.msra.mxu0 %v679_v25  ;;  %698 = vmatpush3.bf16.msra.mxu1 %v697_v43  ;;  %v509_v25 = vld [vmem:[%s1016_s10] ss:$0 sm:$0xff] }
  0x1c   :  { %681 = vmatprep.subr.bf16.mxu0 %v753_v6  ;;  %699 = vmatprep.subr.bf16.mxu1 %v753_v6 }
  0x1f   :  { %683 = vmatpush3.bf16.msra.mxu0 %v682_v28  ;;  %701 = vmatpush3.bf16.msra.mxu1 %v700_v46 }
  0x20   :  { %684 = vmatprep.subr.bf16.mxu0 %v753_v6  ;;  %702 = vmatprep.subr.bf16.mxu1 %v753_v6 }
  0x23   :  { %686 = vmatpush3.bf16.msra.mxu0 %v685_v31  ;;  %704 = vmatpush3.bf16.msra.mxu1 %v703_v49 }
  0x24   :  { %711 = vmatprep.subr.bf16.mxu0 %v753_v6  ;;  %705 = vmatprep.subr.bf16.mxu1 %v753_v6 }
  0x27   :  { %707 = vmatpush3.bf16.msra.mxu1 %v706_v52 }
  0x28   :  { %708 = vmatprep.subr.bf16.mxu1 %v753_v6 }
  0x2b   :  { %710 = vmatpush3.bf16.msra.mxu1 %v709_v0 }
  0xd6   :  { %v118_v53 = vpop.f32.mrb[0].mxu1 }
  0xd7   :  { %v563_v54 = vpop.f32.mrb[1].mxu1 }
  0xdc   :  { %v192_v55 = vpop.f32.mrb[2].mxu1 }
  0xdd   :  { %v193_v57 = vadd.f32 %v192_v55, %v118_v53  ;;  %v570_v58 = vpop.f32.mrb[3].mxu1 }
  0xdf   :  { %v203_v59 = vadd.f32 %v506_v56, %v193_v57 }
  0xe1   :  { %vm204_vm4 = vcmp.gt.f32.partialorder %v203_v59, 0.0  ;;  %v205_v60 = vmul.f32 0.01, %v203_v59 }
  0xe3   :  { %v206_v61 = vsel %vm204_vm4, %v203_v59, %v205_v60 }
  0xe4   :  { %604 = vmatmul.mubr.f32.vlgmr.msra.gmra.mrb[0].mxu0 %v206_v61 }
  0xe5   :  { %657 = vmatprep.mubr.msk.f32.mxu0 %vm752_vm1, %v751_v2  ;;  %v401_v2 = vld [vmem:[%s1015_s9 + $0x10] sm:$0xff]  ;;  %713 = vmatpush3.bf16.msra.mxu0 %v712_v4  ;;  %s495_s9 = sshll.u32 %s754_s18, 4  ;;  %s496_s9 = int_to_ptr.vmem [resolvable:$true] %s495_s9 }
  0xe6   :  { %v715_v7 = vpack.c.bf16 %v402_v5, %v401_v2  ;;  %714 = vmatprep.subr.bf16.mxu0 %v753_v6  ;;  %s727_s8 = scalar_lea.vmem %s496_s9, 128  ;;  %p732_p1 = scmp.lt.s32.totalorder %s496_s9, %s496_s9 }
  0xe7   :  { %p728_p0 = scmp.ne.s32.totalorder %s496_s9, %s727_s8  ;;  %p733_p2 = scmp.lt.s32.totalorder %s727_s8, %s727_s8 }
  0xe9   :  { %716 = vmatpush3.bf16.msra.mxu0 %v715_v7  ;;  %p734_p3 = por %p733_p2, %p732_p1 }
  0xea   :  { %717 = vmatprep.subr.bf16.mxu0 %v753_v6 }
  0xeb   :  { %p735_p4 = pnand %p734_p3, %p728_p0 }
  0xed   :  { %719 = vmatpush3.bf16.msra.mxu0 %v718_v10 }
  0xee   :  { %720 = vmatprep.subr.bf16.mxu0 %v753_v6  ;;  %v721_v6 = vpack.c.bf16 %v406_v18, %v405_v17 }
  0xf1   :  { %722 = vmatpush3.bf16.msra.mxu0 %v721_v6 }
 0x1b7   :  { %v296_v12 = vpop.f32.mrb[0].mxu0 }
 0x1b8   :  { %v297_v13 = vadd.f32 %v507_v11, %v296_v12  ;;  %v605_v14 = vpop.f32.mrb[1].mxu0 }
 0x1ba   :  { %vm300_vm5 = vcmp.gt.f32.partialorder %v297_v13, 0.0  ;;  %v301_v15 = vmul.f32 0.01, %v297_v13 }
 0x1bc   :  { %v302_v16 = vsel %vm300_vm5, %v297_v13, %v301_v15 }
 0x1bd   :  { %639 = vmatmul.mubr.f32.vlgmr.msra.gmra.mrb[4].mxu1 %v302_v16 }
 0x290   :  { %v392_v20 = vpop.f32.mrb[4].mxu1 }
 0x291   :  { %v393_v21 = vadd.f32 %v508_v19, %v392_v20  ;;  %v640_v22 = vpop.f32.mrb[5].mxu1 }
 0x293   :  { %vm396_vm6 = vcmp.gt.f32.partialorder %v393_v21, 0.0  ;;  %v397_v23 = vmul.f32 0.01, %v393_v21 }
 0x295   :  { %v398_v24 = vsel %vm396_vm6, %v393_v21, %v397_v23 }
 0x296   :  { %658 = vmatmul.mubr.msk.f32.vlgmr.msra.gmra.mrb[2].mxu0 %vm414_vm7, %v398_v24 }
 0x369   :  { %v484_v26 = vpop.f32.mrb[2].mxu0 }
 0x36a   :  { %v485_v27 = vadd.f32 %v509_v25, %v484_v26  ;;  %v659_v28 = vpop.f32.mrb[3].mxu0 }
 0x36c   :  { %488 = vst [vmem:[#allocation2] sm:$0xff] %v485_v27 }
 0x36d   :  { %738 = shalt.err (!%p735_p4)
}
 0x36e   :  { %s739_s5 = scalar_lea.hbm %s1017_s11, 128 }
 0x36f   :  { %p740_p5 = scmp.ne.s32.totalorder %s1017_s11, %s739_s5  ;;  %p743_p6 = scmp.lt.u32.totalorder %s739_s5, %s1017_s11 }
 0x371   :  { %p745_p7 = pnand %p743_p6, %p740_p5 }
 0x373   :  { %748 = shalt.err (!%p745_p7)
}
 0x374   :  { %498 = dma.vmem_to_hbm [thread:$0]  %s496_s9, 128, %s1017_s11, [#allocation3]  }
 0x375   :  { %749 = dma.done.wait [#allocation3], 128  }
 0x376   :  { %750 = vsyncadd [#allocation3], 4294967168 }
 0x377   :  { %502 = vsyncpa [#allocation3], 1 }

</bundles_post_ra>
